<compile_context>
chip_gen: v7x
topology: tpu7x:2x2x1
jax: 0.10.0
libtpu: 0.0.40
codegen_flags: <defaults>
</compile_context>

<pallas_src>
import jax
import jax.numpy as jnp
from jax.experimental import pallas as pl
from jax.experimental.pallas import tpu as pltpu


def _round_up(x, m):
    return pl.cdiv(x, m) * m


def _choose_bm(batch, block_rows):
    """Row tile: multiple of 16, capped at block_rows, and split so the row grid
    has >= 2 parallel steps when the batch allows it (v7x megacore)."""
    block_rows = max(16, _round_up(block_rows, 16))
    m16 = _round_up(max(batch, 1), 16)
    if m16 <= 16:
        return 16
    half = _round_up(pl.cdiv(m16, 2), 16)
    return max(16, min(block_rows, half))


def make_classifier_kernel(n_fc, in_dim, mem_alpha, mem_beta, compute_dtype):
    """Builds the fused kernel for a fixed number of fc layers and static blend scalars."""

    def kernel(*refs):
        x0_ref, x1_ref, x2_ref = refs[0], refs[1], refs[2]
        idx = 3
        fc_refs = [(refs[idx + 2 * i], refs[idx + 2 * i + 1]) for i in range(n_fc)]
        idx += 2 * n_fc
        wl_ref, bl_ref = refs[idx], refs[idx + 1]
        wm_ref, bm_ref = refs[idx + 2], refs[idx + 3]
        o_ref = refs[idx + 4]

        def mlp(h):
            # bf16 cast happens here (MXU operands only); accumulation, bias add
            # and tanh stay in f32.
            h = h.astype(compute_dtype)
            for w_ref, b_ref in fc_refs:
                z = jnp.dot(h, w_ref[...], preferred_element_type=jnp.float32)
                z = z + b_ref[...]                 # bias add in f32
                h = jnp.tanh(z).astype(compute_dtype)   # dropout == identity (eval)
            return jnp.dot(h, wl_ref[...], preferred_element_type=jnp.float32) + bl_ref[...]

        # input[0] (main path) and input[1] (memory-key path) reuse the same
        # VMEM-resident weights: two row-block chains, weight-stationary MXU reuse.
        out_main = mlp(x0_ref[...])
        o3 = mlp(x1_ref[...])

        # memory-value path: memfc(input[2]).  K/N are tiny -> unrolled VPU FMAs, f32.
        x2 = x2_ref[...]
        wm = wm_ref[...]
        o2 = bm_ref[...] + x2[:, 0:1] * wm[0:1, :]
        for k in range(1, in_dim):
            o2 = o2 + x2[:, k:k + 1] * wm[k:k + 1, :]

        # o4  = beta*o2 + (1-beta)*o3      -> o3 + beta*(o2 - o3)
        # out = (1-alpha)*main + alpha*o4  -> main + alpha*(o4 - main)
        o4 = o3 + mem_beta * (o2 - o3)
        o_ref[...] = (out_main + mem_alpha * (o4 - out_main)).astype(o_ref.dtype)

    return kernel


def classifier_forward(x0, x1, x2, fc_params, w_last, b_last, w_mem, b_mem,
                       *, mem_alpha, mem_beta, block_rows=512, use_bf16=True,
                       lane_width=128):
    """Fused Classifier forward.

    x0: [B, pair_rep_dim]   (input[0], main path)
    x1: [B, pair_rep_dim]   (input[1], memory-key path)
    x2: [B, mem_in_dim]     (input[2], memory-value path)
    fc_params: list of (W[in, out], b[out])  -- W pre-transposed vs. torch's [out, in]
    w_last: [last_in, nclass], b_last: [nclass]
    w_mem : [mem_in_dim, nclass], b_mem: [nclass]
    """
    B, D = x0.shape
    in_dim = x2.shape[1]
    C = w_last.shape[1]
    n_fc = len(fc_params)

    cdt = jnp.bfloat16 if use_bf16 else jnp.float32
    Cp = _round_up(C, lane_width)          # lane-dense output columns (unmasked vst)

    bm = _choose_bm(B, block_rows)
    grid_m = pl.cdiv(B, bm)
    m_out = grid_m * bm                    # only the output is row-padded (no input copy)

    # Inputs stay f32 in HBM; boundary blocks read OOB rows (garbage rows are
    # discarded by the final [:B] slice).  No wrapper-side pad/cast HBM pass.
    args = [x0, x1, x2]
    in_specs = [
        pl.BlockSpec((bm, D), lambda i: (i, 0)),
        pl.BlockSpec((bm, D), lambda i: (i, 0)),
        pl.BlockSpec((bm, in_dim), lambda i: (i, 0)),
    ]

    def add_weight(w, b, dtype, pad_cols):
        if pad_cols and w.shape[1] < Cp:
            w = jnp.pad(w, ((0, 0), (0, Cp - w.shape[1])))
            b = jnp.pad(b, ((0, Cp - b.shape[0]),))
        w = w.astype(dtype)
        b = b.reshape(1, -1).astype(jnp.float32)
        args.append(w)
        args.append(b)
        # Constant index_map -> block stays VMEM-resident across the row grid.
        in_specs.append(pl.BlockSpec(w.shape, lambda i: (0, 0)))
        in_specs.append(pl.BlockSpec(b.shape, lambda i: (0, 0)))

    for (w, b) in fc_params:
        add_weight(w, b, cdt, pad_cols=False)
    add_weight(w_last, b_last, cdt, pad_cols=True)
    add_weight(w_mem, b_mem, jnp.float32, pad_cols=True)   # VPU path: keep f32

    kernel = make_classifier_kernel(n_fc, in_dim, float(mem_alpha), float(mem_beta), cdt)

    out = pl.pallas_call(
        kernel,
        out_shape=jax.ShapeDtypeStruct((m_out, Cp), jnp.float32),
        grid_spec=pltpu.PrefetchScalarGridSpec(
            num_scalar_prefetch=0,
            grid=(grid_m,),
            in_specs=in_specs,
            out_specs=pl.BlockSpec((bm, Cp), lambda i: (i, 0)),
        ),
        compiler_params=pltpu.CompilerParams(
            dimension_semantics=("parallel",),
        ),
    )(*args)
    return out[:B, :C]


def classifier_ref(x0, x1, x2, fc_params, w_last, b_last, w_mem, b_mem,
                   mem_alpha, mem_beta):
    hp = jax.lax.Precision.HIGHEST

    def mlp(h):
        for w, b in fc_params:
            h = jnp.tanh(jnp.dot(h, w, precision=hp) + b)
        return jnp.dot(h, w_last, precision=hp) + b_last

    out = mlp(x0)
    o3 = mlp(x1)
    o2 = jnp.dot(x2, w_mem, precision=hp) + b_mem
    o4 = o2 * mem_beta + o3 * (1.0 - mem_beta)
    return out * (1.0 - mem_alpha) + o4 * mem_alpha


if __name__ == "__main__":
    # Small config consistent with the module:
    #   pair_rep_dim=256, clf_fc_num=2, clf_fc_dim=128, nclass=4,
    #   need_mem_bank=True, corpus_splitting=3 -> memfc in_dim=4,
    #   use_mem_key=True, use_mem_value=True, mem_alpha=0.3, mem_beta=0.6,
    #   dropout inactive (eval mode).
    pair_rep_dim, clf_fc_dim, clf_fc_num = 256, 128, 2
    nclass, mem_in_dim = 4, 4
    mem_alpha, mem_beta = 0.3, 0.6
    batch = 50  # deliberately not tile-aligned: exercises partial boundary blocks

    key = jax.random.PRNGKey(0)
    keys = iter(jax.random.split(key, 4 + 2 * clf_fc_num + 4))

    x0 = jax.random.normal(next(keys), (batch, pair_rep_dim), jnp.float32)
    x1 = jax.random.normal(next(keys), (batch, pair_rep_dim), jnp.float32)
    x2 = jax.random.normal(next(keys), (batch, mem_in_dim), jnp.float32)

    def uinit(k, shape, bound=0.1):
        return jax.random.uniform(k, shape, jnp.float32, -bound, bound)

    fc_params = []
    d_in = pair_rep_dim
    for _ in range(clf_fc_num):
        kw, kb = next(keys), next(keys)
        # stored pre-transposed: [in, out]
        fc_params.append((uinit(kw, (d_in, clf_fc_dim)), uinit(kb, (clf_fc_dim,))))
        d_in = clf_fc_dim

    w_last = uinit(next(keys), (d_in, nclass))
    b_last = uinit(next(keys), (nclass,))
    w_mem = uinit(next(keys), (mem_in_dim, nclass))
    b_mem = uinit(next(keys), (nclass,))

    ref = classifier_ref(x0, x1, x2, fc_params, w_last, b_last, w_mem, b_mem,
                         mem_alpha, mem_beta)

    # f32 path with a small explicit row tile -> 4-step grid + partial boundary block.
    out_f32 = classifier_forward(x0, x1, x2, fc_params, w_last, b_last, w_mem, b_mem,
                                 mem_alpha=mem_alpha, mem_beta=mem_beta,
                                 block_rows=16, use_bf16=False)
    jax.block_until_ready(out_f32)
    assert out_f32.shape == (batch, nclass)
    assert jnp.allclose(out_f32, ref, atol=2e-4, rtol=2e-4), "f32 mismatch vs reference"

    # Default path: bf16 MXU operands (f32 accumulation), lane-dense 128-wide output,
    # >= 2 parallel grid steps for v7x megacore.
    out_bf16 = classifier_forward(x0, x1, x2, fc_params, w_last, b_last, w_mem, b_mem,
                                  mem_alpha=mem_alpha, mem_beta=mem_beta)
    jax.block_until_ready(out_bf16)
    assert out_bf16.shape == (batch, nclass)
    assert jnp.allclose(out_bf16, ref, atol=3e-2, rtol=3e-2), "bf16 mismatch vs reference"

    print("KERNEL_OK")
</pallas_src>

<mosaic_0001>
module attributes {stable_mosaic.version = 11 : i64} {
  func.func @kernel(%arg0: i32, %arg1: memref<16x256xf32, #tpu.memory_space<vmem>>, %arg2: memref<16x256xf32, #tpu.memory_space<vmem>>, %arg3: memref<16x4xf32, #tpu.memory_space<vmem>>, %arg4: memref<256x128xf32, #tpu.memory_space<vmem>>, %arg5: memref<1x128xf32, #tpu.memory_space<vmem>>, %arg6: memref<128x128xf32, #tpu.memory_space<vmem>>, %arg7: memref<1x128xf32, #tpu.memory_space<vmem>>, %arg8: memref<128x128xf32, #tpu.memory_space<vmem>>, %arg9: memref<1x128xf32, #tpu.memory_space<vmem>>, %arg10: memref<4x128xf32, #tpu.memory_space<vmem>>, %arg11: memref<1x128xf32, #tpu.memory_space<vmem>>, %arg12: memref<16x128xf32, #tpu.memory_space<vmem>>) attributes {dimension_semantics = [#tpu.dimension_semantics<parallel>], iteration_bounds = array<i64: 4>, scalar_prefetch = 0 : i64, scratch_operands = 0 : i64, tpu.core_type = #tpu.core_type<tc>, window_params = [{transform_indices = @transform_0, window_bounds = array<i64: 16, 256>}, {transform_indices = @transform_1, window_bounds = array<i64: 16, 256>}, {transform_indices = @transform_2, window_bounds = array<i64: 16, 4>}, {pipeline_mode = #tpu.pipeline_mode<synchronous>, transform_indices = @transform_3, window_bounds = array<i64: 256, 128>}, {pipeline_mode = #tpu.pipeline_mode<synchronous>, transform_indices = @transform_4, window_bounds = array<i64: 1, 128>}, {pipeline_mode = #tpu.pipeline_mode<synchronous>, transform_indices = @transform_5, window_bounds = array<i64: 128, 128>}, {pipeline_mode = #tpu.pipeline_mode<synchronous>, transform_indices = @transform_6, window_bounds = array<i64: 1, 128>}, {pipeline_mode = #tpu.pipeline_mode<synchronous>, transform_indices = @transform_7, window_bounds = array<i64: 128, 128>}, {pipeline_mode = #tpu.pipeline_mode<synchronous>, transform_indices = @transform_8, window_bounds = array<i64: 1, 128>}, {pipeline_mode = #tpu.pipeline_mode<synchronous>, transform_indices = @transform_9, window_bounds = array<i64: 4, 128>}, {pipeline_mode = #tpu.pipeline_mode<synchronous>, transform_indices = @transform_10, window_bounds = array<i64: 1, 128>}, {transform_indices = @transform_11, window_bounds = array<i64: 16, 128>}]} {
    %c0 = arith.constant 0 : index
    %c0_0 = arith.constant 0 : index
    %0 = vector.load %arg1[%c0, %c0_0] : memref<16x256xf32, #tpu.memory_space<vmem>>, vector<16x256xf32>
    %c0_1 = arith.constant 0 : index
    %c0_2 = arith.constant 0 : index
    %1 = vector.load %arg4[%c0_1, %c0_2] : memref<256x128xf32, #tpu.memory_space<vmem>>, vector<256x128xf32>
    %cst = arith.constant dense<0.000000e+00> : vector<16x128xf32>
    %2 = tpu.matmul %0, %1, %cst {dimension_numbers = #tpu.dot_dimension_numbers<[1], [0], [0], [1], [0, 0, 1, 1], [], []>} : vector<16x256xf32>, vector<256x128xf32>, vector<16x128xf32> -> vector<16x128xf32>
    %c0_3 = arith.constant 0 : index
    %c0_4 = arith.constant 0 : index
    %3 = vector.load %arg5[%c0_3, %c0_4] : memref<1x128xf32, #tpu.memory_space<vmem>>, vector<1x128xf32>
    %4 = vector.broadcast %3 : vector<1x128xf32> to vector<16x128xf32>
    %5 = arith.addf %2, %4 : vector<16x128xf32>
    %6 = math.tanh %5 : vector<16x128xf32>
    %c0_5 = arith.constant 0 : index
    %c0_6 = arith.constant 0 : index
    %7 = vector.load %arg6[%c0_5, %c0_6] : memref<128x128xf32, #tpu.memory_space<vmem>>, vector<128x128xf32>
    %cst_7 = arith.constant dense<0.000000e+00> : vector<16x128xf32>
    %8 = tpu.matmul %6, %7, %cst_7 {dimension_numbers = #tpu.dot_dimension_numbers<[1], [0], [0], [1], [0, 0, 1, 1], [], []>} : vector<16x128xf32>, vector<128x128xf32>, vector<16x128xf32> -> vector<16x128xf32>
    %c0_8 = arith.constant 0 : index
    %c0_9 = arith.constant 0 : index
    %9 = vector.load %arg7[%c0_8, %c0_9] : memref<1x128xf32, #tpu.memory_space<vmem>>, vector<1x128xf32>
    %10 = vector.broadcast %9 : vector<1x128xf32> to vector<16x128xf32>
    %11 = arith.addf %8, %10 : vector<16x128xf32>
    %12 = math.tanh %11 : vector<16x128xf32>
    %c0_10 = arith.constant 0 : index
    %c0_11 = arith.constant 0 : index
    %13 = vector.load %arg8[%c0_10, %c0_11] : memref<128x128xf32, #tpu.memory_space<vmem>>, vector<128x128xf32>
    %cst_12 = arith.constant dense<0.000000e+00> : vector<16x128xf32>
    %14 = tpu.matmul %12, %13, %cst_12 {dimension_numbers = #tpu.dot_dimension_numbers<[1], [0], [0], [1], [0, 0, 1, 1], [], []>} : vector<16x128xf32>, vector<128x128xf32>, vector<16x128xf32> -> vector<16x128xf32>
    %c0_13 = arith.constant 0 : index
    %c0_14 = arith.constant 0 : index
    %15 = vector.load %arg9[%c0_13, %c0_14] : memref<1x128xf32, #tpu.memory_space<vmem>>, vector<1x128xf32>
    %16 = vector.broadcast %15 : vector<1x128xf32> to vector<16x128xf32>
    %17 = arith.addf %14, %16 : vector<16x128xf32>
    %c0_15 = arith.constant 0 : index
    %c0_16 = arith.constant 0 : index
    %18 = vector.load %arg2[%c0_15, %c0_16] : memref<16x256xf32, #tpu.memory_space<vmem>>, vector<16x256xf32>
    %c0_17 = arith.constant 0 : index
    %c0_18 = arith.constant 0 : index
    %19 = vector.load %arg4[%c0_17, %c0_18] : memref<256x128xf32, #tpu.memory_space<vmem>>, vector<256x128xf32>
    %cst_19 = arith.constant dense<0.000000e+00> : vector<16x128xf32>
    %20 = tpu.matmul %18, %19, %cst_19 {dimension_numbers = #tpu.dot_dimension_numbers<[1], [0], [0], [1], [0, 0, 1, 1], [], []>} : vector<16x256xf32>, vector<256x128xf32>, vector<16x128xf32> -> vector<16x128xf32>
    %c0_20 = arith.constant 0 : index
    %c0_21 = arith.constant 0 : index
    %21 = vector.load %arg5[%c0_20, %c0_21] : memref<1x128xf32, #tpu.memory_space<vmem>>, vector<1x128xf32>
    %22 = vector.broadcast %21 : vector<1x128xf32> to vector<16x128xf32>
    %23 = arith.addf %20, %22 : vector<16x128xf32>
    %24 = math.tanh %23 : vector<16x128xf32>
    %c0_22 = arith.constant 0 : index
    %c0_23 = arith.constant 0 : index
    %25 = vector.load %arg6[%c0_22, %c0_23] : memref<128x128xf32, #tpu.memory_space<vmem>>, vector<128x128xf32>
    %cst_24 = arith.constant dense<0.000000e+00> : vector<16x128xf32>
    %26 = tpu.matmul %24, %25, %cst_24 {dimension_numbers = #tpu.dot_dimension_numbers<[1], [0], [0], [1], [0, 0, 1, 1], [], []>} : vector<16x128xf32>, vector<128x128xf32>, vector<16x128xf32> -> vector<16x128xf32>
    %c0_25 = arith.constant 0 : index
    %c0_26 = arith.constant 0 : index
    %27 = vector.load %arg7[%c0_25, %c0_26] : memref<1x128xf32, #tpu.memory_space<vmem>>, vector<1x128xf32>
    %28 = vector.broadcast %27 : vector<1x128xf32> to vector<16x128xf32>
    %29 = arith.addf %26, %28 : vector<16x128xf32>
    %30 = math.tanh %29 : vector<16x128xf32>
    %c0_27 = arith.constant 0 : index
    %c0_28 = arith.constant 0 : index
    %31 = vector.load %arg8[%c0_27, %c0_28] : memref<128x128xf32, #tpu.memory_space<vmem>>, vector<128x128xf32>
    %cst_29 = arith.constant dense<0.000000e+00> : vector<16x128xf32>
    %32 = tpu.matmul %30, %31, %cst_29 {dimension_numbers = #tpu.dot_dimension_numbers<[1], [0], [0], [1], [0, 0, 1, 1], [], []>} : vector<16x128xf32>, vector<128x128xf32>, vector<16x128xf32> -> vector<16x128xf32>
    %c0_30 = arith.constant 0 : index
    %c0_31 = arith.constant 0 : index
    %33 = vector.load %arg9[%c0_30, %c0_31] : memref<1x128xf32, #tpu.memory_space<vmem>>, vector<1x128xf32>
    %34 = vector.broadcast %33 : vector<1x128xf32> to vector<16x128xf32>
    %35 = arith.addf %32, %34 : vector<16x128xf32>
    %c0_32 = arith.constant 0 : index
    %c0_33 = arith.constant 0 : index
    %36 = vector.load %arg3[%c0_32, %c0_33] : memref<16x4xf32, #tpu.memory_space<vmem>>, vector<16x4xf32>
    %c0_34 = arith.constant 0 : index
    %c0_35 = arith.constant 0 : index
    %37 = vector.load %arg10[%c0_34, %c0_35] : memref<4x128xf32, #tpu.memory_space<vmem>>, vector<4x128xf32>
    %c0_36 = arith.constant 0 : index
    %c0_37 = arith.constant 0 : index
    %38 = vector.load %arg11[%c0_36, %c0_37] : memref<1x128xf32, #tpu.memory_space<vmem>>, vector<1x128xf32>
    %39 = vector.extract_strided_slice %36 {offsets = [0, 0], sizes = [16, 1], strides = [1, 1]} : vector<16x4xf32> to vector<16x1xf32>
    %40 = vector.extract_strided_slice %37 {offsets = [0, 0], sizes = [1, 128], strides = [1, 1]} : vector<4x128xf32> to vector<1x128xf32>
    %41 = vector.broadcast %39 : vector<16x1xf32> to vector<16x128xf32>
    %42 = vector.broadcast %40 : vector<1x128xf32> to vector<16x128xf32>
    %43 = arith.mulf %41, %42 : vector<16x128xf32>
    %44 = vector.broadcast %38 : vector<1x128xf32> to vector<16x128xf32>
    %45 = arith.addf %44, %43 : vector<16x128xf32>
    %46 = vector.extract_strided_slice %36 {offsets = [0, 1], sizes = [16, 1], strides = [1, 1]} : vector<16x4xf32> to vector<16x1xf32>
    %47 = vector.extract_strided_slice %37 {offsets = [1, 0], sizes = [1, 128], strides = [1, 1]} : vector<4x128xf32> to vector<1x128xf32>
    %48 = vector.broadcast %46 : vector<16x1xf32> to vector<16x128xf32>
    %49 = vector.broadcast %47 : vector<1x128xf32> to vector<16x128xf32>
    %50 = arith.mulf %48, %49 : vector<16x128xf32>
    %51 = arith.addf %45, %50 : vector<16x128xf32>
    %52 = vector.extract_strided_slice %36 {offsets = [0, 2], sizes = [16, 1], strides = [1, 1]} : vector<16x4xf32> to vector<16x1xf32>
    %53 = vector.extract_strided_slice %37 {offsets = [2, 0], sizes = [1, 128], strides = [1, 1]} : vector<4x128xf32> to vector<1x128xf32>
    %54 = vector.broadcast %52 : vector<16x1xf32> to vector<16x128xf32>
    %55 = vector.broadcast %53 : vector<1x128xf32> to vector<16x128xf32>
    %56 = arith.mulf %54, %55 : vector<16x128xf32>
    %57 = arith.addf %51, %56 : vector<16x128xf32>
    %58 = vector.extract_strided_slice %36 {offsets = [0, 3], sizes = [16, 1], strides = [1, 1]} : vector<16x4xf32> to vector<16x1xf32>
    %59 = vector.extract_strided_slice %37 {offsets = [3, 0], sizes = [1, 128], strides = [1, 1]} : vector<4x128xf32> to vector<1x128xf32>
    %60 = vector.broadcast %58 : vector<16x1xf32> to vector<16x128xf32>
    %61 = vector.broadcast %59 : vector<1x128xf32> to vector<16x128xf32>
    %62 = arith.mulf %60, %61 : vector<16x128xf32>
    %63 = arith.addf %57, %62 : vector<16x128xf32>
    %64 = arith.subf %63, %35 : vector<16x128xf32>
    %cst_38 = arith.constant 6.000000e-01 : f32
    %65 = vector.broadcast %cst_38 : f32 to vector<16x128xf32>
    %66 = arith.mulf %65, %64 : vector<16x128xf32>
    %67 = arith.addf %35, %66 : vector<16x128xf32>
    %68 = arith.subf %67, %17 : vector<16x128xf32>
    %cst_39 = arith.constant 3.000000e-01 : f32
    %69 = vector.broadcast %cst_39 : f32 to vector<16x128xf32>
    %70 = arith.mulf %69, %68 : vector<16x128xf32>
    %71 = arith.addf %17, %70 : vector<16x128xf32>
    %c0_40 = arith.constant 0 : index
    %c0_41 = arith.constant 0 : index
    %72 = vector.load %arg12[%c0_40, %c0_41] : memref<16x128xf32, #tpu.memory_space<vmem>>, vector<16x128xf32>
    tpu.vector_store %arg12[%c0_40, %c0_41], %71 {strides = array<i32>} : memref<16x128xf32, #tpu.memory_space<vmem>>, vector<16x128xf32>,
    return
  }
  func.func @transform_0(%arg0: i32) -> (i32, i32) {
    %c0_i32 = arith.constant 0 : i32
    %c0_i32_0 = arith.constant 0 : i32
    return %arg0, %c0_i32 : i32, i32
  }
  func.func @transform_1(%arg0: i32) -> (i32, i32) {
    %c0_i32 = arith.constant 0 : i32
    %c0_i32_0 = arith.constant 0 : i32
    return %arg0, %c0_i32 : i32, i32
  }
  func.func @transform_2(%arg0: i32) -> (i32, i32) {
    %c0_i32 = arith.constant 0 : i32
    %c0_i32_0 = arith.constant 0 : i32
    return %arg0, %c0_i32 : i32, i32
  }
  func.func @transform_3(%arg0: i32) -> (i32, i32) {
    %c0_i32 = arith.constant 0 : i32
    %c0_i32_0 = arith.constant 0 : i32
    %c0_i32_1 = arith.constant 0 : i32
    return %c0_i32, %c0_i32_0 : i32, i32
  }
  func.func @transform_4(%arg0: i32) -> (i32, i32) {
    %c0_i32 = arith.constant 0 : i32
    %c0_i32_0 = arith.constant 0 : i32
    %c0_i32_1 = arith.constant 0 : i32
    return %c0_i32, %c0_i32_0 : i32, i32
  }
  func.func @transform_5(%arg0: i32) -> (i32, i32) {
    %c0_i32 = arith.constant 0 : i32
    %c0_i32_0 = arith.constant 0 : i32
    %c0_i32_1 = arith.constant 0 : i32
    return %c0_i32, %c0_i32_0 : i32, i32
  }
  func.func @transform_6(%arg0: i32) -> (i32, i32) {
    %c0_i32 = arith.constant 0 : i32
    %c0_i32_0 = arith.constant 0 : i32
    %c0_i32_1 = arith.constant 0 : i32
    return %c0_i32, %c0_i32_0 : i32, i32
  }
  func.func @transform_7(%arg0: i32) -> (i32, i32) {
    %c0_i32 = arith.constant 0 : i32
    %c0_i32_0 = arith.constant 0 : i32
    %c0_i32_1 = arith.constant 0 : i32
    return %c0_i32, %c0_i32_0 : i32, i32
  }
  func.func @transform_8(%arg0: i32) -> (i32, i32) {
    %c0_i32 = arith.constant 0 : i32
    %c0_i32_0 = arith.constant 0 : i32
    %c0_i32_1 = arith.constant 0 : i32
    return %c0_i32, %c0_i32_0 : i32, i32
  }
  func.func @transform_9(%arg0: i32) -> (i32, i32) {
    %c0_i32 = arith.constant 0 : i32
    %c0_i32_0 = arith.constant 0 : i32
    %c0_i32_1 = arith.constant 0 : i32
    return %c0_i32, %c0_i32_0 : i32, i32
  }
  func.func @transform_10(%arg0: i32) -> (i32, i32) {
    %c0_i32 = arith.constant 0 : i32
    %c0_i32_0 = arith.constant 0 : i32
    %c0_i32_1 = arith.constant 0 : i32
    return %c0_i32, %c0_i32_0 : i32, i32
  }
  func.func @transform_11(%arg0: i32) -> (i32, i32) {
    %c0_i32 = arith.constant 0 : i32
    %c0_i32_0 = arith.constant 0 : i32
    return %arg0, %c0_i32 : i32, i32
  }
}

</mosaic_0001>

<bundles_post_ra>
// kernel: tpu_custom_call.1
= control target key start
LH: loop header
LB: loop body
LE: loop exit
PB: predicated region body
PF: predicated region fallthrough
CT: control target
= control target key end

     0   :  { %s2750_s0 = inlined_call_operand.hbm [shape: f32[50,256], index: 0, kind: input, shape index: {}]   ;;  %s2751_s1 = inlined_call_operand.hbm [shape: f32[50,256], index: 1, kind: input, shape index: {}]   ;;  %s2752_s2 = inlined_call_operand.vmem [shape: f32[50,4], index: 2, kind: input, shape index: {}]   ;;  %s2753_s3 = inlined_call_operand.hbm [shape: f32[256,128], index: 3, kind: input, shape index: {}]   ;;  %s2754_s4 = inlined_call_operand.vmem [shape: f32[1,128], index: 4, kind: input, shape index: {}]   ;;  %s2755_s5 = inlined_call_operand.hbm [shape: f32[128,128], index: 5, kind: input, shape index: {}]   ;;  %s2756_s6 = inlined_call_operand.vmem [shape: f32[1,128], index: 6, kind: input, shape index: {}]   ;;  %s2757_s7 = inlined_call_operand.hbm [shape: f32[128,128], index: 7, kind: input, shape index: {}]   ;;  %s2758_s8 = inlined_call_operand.vmem [shape: f32[1,128], index: 8, kind: input, shape index: {}]   ;;  %s2759_s9 = inlined_call_operand.vmem [shape: f32[4,128], index: 9, kind: input, shape index: {}]   ;;  %s2760_s10 = inlined_call_operand.vmem [shape: f32[1,128], index: 10, kind: input, shape index: {}]   ;;  %s2761_s11 = inlined_call_operand.hbm [shape: f32[64,128], index: 11, kind: output, shape index: {}]  }
   0x1   :  { %2773 = sst [smem:[#allocation22_spill]] %s2755_s5 }
   0x2   :  { %2774 = sst [smem:[#allocation23_spill]] %s2758_s8 }
   0x3   :  { %2775 = sst [smem:[#allocation24_spill]] %s2760_s10 }
   0x4   :  { %2776 = sst [smem:[#allocation25_spill]] %s2761_s11 }
   0x5   :  { %16 = vsyncpa [#allocation3], 0 }
   0x6   :  { %18 = vsyncpa [#allocation3 + $0x1], 0 }
   0x7   :  { %19 = vsyncpa [#allocation6], 0 }
   0x8   :  { %21 = vsyncpa [#allocation6 + $0x1], 0 }
   0x9   :  { %22 = vsyncpa [#allocation9], 0 }
   0xa   :  { %23 = vsyncpa [#allocation4], 0 }
   0xb   :  { %25 = vsyncpa [#allocation4 + $0x1], 0  ;;  %s2283_s17 = smov 0   ;;  %s2285_s18 = smov 0  }
   0xc   :  { %s2287_s19 = smov 0   ;;  %s2289_s20 = smov 0  }
   0xd LB: > { %2777 = sst [smem:[#allocation17_spill]] %s2191_s17  ;;  %s2304_s21 = sadd.s32 4294967295, %s2203_s20   ;;  %s2203_s20 = sphi %s2289_s20, %s2806_s20   ;;  %s2199_s19 = sphi %s2287_s19, %s2810_s19   ;;  %s2195_s18 = sphi %s2285_s18, %s2809_s18   ;;  %s2191_s17 = sphi %s2283_s17, %s2808_s17  }
   0xe   : > { %s1350_s22 = sadd.s32 4294967294, %s2203_s20   ;;  %s2308_s23 = sadd.s32 1, %s2203_s20  }
   0xf   : > { %2778 = sst [smem:[#allocation18_spill]] %s2308_s23  ;;  %s38_s24 = sadd.s32 1, %s2199_s19 }
  0x10   : > { %s35_s25 = ssub.s32 %s2203_s20, %s2308_s23  ;;  %p45_p0 = scmp.ne.s32.totalorder %s2199_s19, %s2195_s18 }
  0x11   : > { %p36_p1 = scmp.eq.s32.totalorder %s35_s25, 0  ;;  %p46_p2 = scmp.eq.s32.totalorder %s2203_s20, 0 }
  0x12   : > { %p51_p3 = scmp.ne.s32.totalorder %s2195_s18, %s2191_s17  ;;  %p2766_p4 = scmp.eq.s32.totalorder %s2304_s21, 0 }
  0x13   : > { %s2320_s26 = scalar_select %p36_p1, %s2199_s19, %s38_s24  }
  0x14   : > { %p2322_p5 = por %p46_p2, %p45_p0  ;;  %p2328_p6 = por %p2766_p4, %p51_p3 }
  0x15   : > { %2779 = sst [smem:[#allocation19_spill]] %s2320_s26  ;;  %p295_p7 = scmp.eq.s32.totalorder %s2304_s21, 3 }
  0x16   : > { %s2780_s27 = scalar_select %p2322_p5, 1, 0 }
  0x17   : > { %s2781_s28 = scalar_select %p2328_p6, 1, 0 }
  0x18   : > { %p301_p8 = scmp.eq.s32.totalorder %s1350_s22, 3  ;;  %p1351_p9 = scmp.ge.s32.totalorder %s2203_s20, 1 }
  0x19   : > { %p308_p10 = scmp.lt.s32.totalorder %s2203_s20, 5  ;;  %p2335_p11 = por %p295_p7, %p45_p0 }
  0x1a   : > { %p2339_p12 = por %p301_p8, %p51_p3  ;;  %s2205_s13 = smov [#allocation8]  }
  0x1b   : > { %s2782_s29 = scalar_select %p2335_p11, 1, 0 }
  0x1c   : > { %s2784_s30 = scalar_select %p2339_p12, 1, 0 }
  0x1d   : > { %2783 = sst [smem:[#allocation20_spill]] %s2782_s29  ;;  %p2343_p13 = pnand %p1351_p9, %p308_p10 }
  0x1e   : > { %2785 = sst [smem:[#allocation21_spill]] %s2784_s30  ;;  %s336_s14 = sshll.u32 %s2205_s13, 4  ;;  %s337_s14 = int_to_ptr.vmem [resolvable:$true] %s336_s14 }
  0x1f   : > { %s2786_s12 = scalar_select %p2343_p13, 1, 0 }
  0x20   : > { %p1895_p1 = pneg %p2343_p13  ;;  %s2206_s16 = smov [#allocation7]  }
  0x21   : > { %s320_s22 = sshll.u32 %s2206_s16, 4  ;;  %s2788_s5 = sld [smem:[#allocation22_spill]]  ;;  %s2355_s22 = int_to_ptr.vmem [resolvable:$true] %s320_s22 }
  0x22   : > { %p2351_p2 = pnand %p1895_p1, %p2766_p4 }
  0x24   : > { %p2365_p3 = pneg %p2351_p2 }
  0x27   : > { %s1985_s26 = scalar_lea.hbm %s2788_s5, 2048 }
  0x28   : > { %p1986_p0 = scmp.ne.s32.totalorder %s2788_s5, %s1985_s26  ;;  %p1992_p9 = scmp.lt.u32.totalorder %s1985_s26, %s2788_s5 }
  0x2a   : > { %p1988_p7 = pnand %p2365_p3, %p1986_p0 }
  0x2c   : > { %p1989_p8 = pneg %p1988_p7 }
  0x2e   : > { %p1994_p10 = pnand %p1992_p9, %p1989_p8 }
  0x30   : > { %1997 = shalt.err (!%p1994_p10)
}
  0x31   : > { %s1998_s24 = scalar_lea.vmem %s337_s14, 2048  ;;  %p2006_p11 = scmp.lt.s32.totalorder %s337_s14, %s337_s14 }
  0x32   : > { %p1999_p1 = scmp.ne.s32.totalorder %s337_s14, %s1998_s24  ;;  %p2007_p6 = scmp.lt.s32.totalorder %s1998_s24, %s1998_s24 }
  0x34   : > { %p2001_p4 = pnand %p1999_p1, %p2365_p3  ;;  %p2008_p13 = por %p2007_p6, %p2006_p11 }
  0x36   : > { %p2002_p12 = pneg %p2001_p4 }
  0x38   : > { %p2009_p5 = pnand %p2008_p13, %p2002_p12 }
  0x3a   : > { %2012 = shalt.err (!%p2009_p5)
}
  0x3b   : > { %s2207_s23 = smov 128   ;;  %s2208_s30 = smov 8  }
  0x3c   : > { %1901 = dma.hbm_to_vmem [thread:$0]  (!%p2351_p2), %s2788_s5, 2048, %s337_s14, [#allocation9], %s2207_s23, %s2207_s23, %s2208_s30  }
  0x3d   : > { %s2013_s11 = scalar_lea.hbm %s2753_s3, 4096 }
  0x3e   : > { %p2014_p4 = scmp.ne.s32.totalorder %s2753_s3, %s2013_s11  ;;  %p2020_p11 = scmp.lt.u32.totalorder %s2013_s11, %s2753_s3 }
  0x40   : > { %p2016_p5 = pnand %p2014_p4, %p2365_p3 }
  0x42   : > { %p2017_p6 = pneg %p2016_p5 }
  0x44   : > { %p2022_p12 = pnand %p2020_p11, %p2017_p6 }
  0x46   : > { %2025 = shalt.err (!%p2022_p12)
}
  0x47   : > { %s2026_s14 = scalar_lea.vmem %s2355_s22, 4096  ;;  %p2034_p8 = scmp.lt.s32.totalorder %s2355_s22, %s2355_s22 }
  0x48   : > { %p2027_p13 = scmp.ne.s32.totalorder %s2355_s22, %s2026_s14  ;;  %p2035_p9 = scmp.lt.s32.totalorder %s2026_s14, %s2026_s14 }
  0x4a   : > { %p2029_p0 = pnand %p2027_p13, %p2365_p3  ;;  %p2036_p10 = por %p2035_p9, %p2034_p8 }
  0x4c   : > { %p2030_p7 = pneg %p2029_p0 }
  0x4e   : > { %p2037_p1 = pnand %p2036_p10, %p2030_p7 }
  0x50   : > { %2040 = shalt.err (!%p2037_p1)
}
  0x51   : > { %1898 = dma.hbm_to_vmem [thread:$0]  (!%p2351_p2), %s2753_s3, 4096, %s2355_s22, [#allocation6], %s2207_s23, %s2207_s23, %s2208_s30  }
  0x52   : > { %s2209_s11 = smov [#allocation10]   ;;  %s2041_s25 = scalar_lea.hbm %s2757_s7, 2048 }
  0x53   : > { %s352_s29 = sshll.u32 %s2209_s11, 4  ;;  %p2042_p4 = scmp.ne.s32.totalorder %s2757_s7, %s2041_s25  ;;  %s353_s29 = int_to_ptr.vmem [resolvable:$true] %s352_s29 }
  0x54   : > { %p2048_p11 = scmp.lt.u32.totalorder %s2041_s25, %s2757_s7 }
  0x55   : > { %p2044_p5 = pnand %p2042_p4, %p2365_p3 }
  0x57   : > { %p2045_p6 = pneg %p2044_p5 }
  0x59   : > { %p2050_p12 = pnand %p2048_p11, %p2045_p6 }
  0x5b   : > { %2053 = shalt.err (!%p2050_p12)
}
  0x5c   : > { %s2054_s22 = scalar_lea.vmem %s353_s29, 2048  ;;  %p2062_p8 = scmp.lt.s32.totalorder %s353_s29, %s353_s29 }
  0x5d   : > { %p2055_p13 = scmp.ne.s32.totalorder %s353_s29, %s2054_s22  ;;  %p2063_p9 = scmp.lt.s32.totalorder %s2054_s22, %s2054_s22 }
  0x5f   : > { %p2057_p0 = pnand %p2055_p13, %p2365_p3  ;;  %p2064_p10 = por %p2063_p9, %p2062_p8 }
  0x61   : > { %p2058_p7 = pneg %p2057_p0 }
  0x63   : > { %p2065_p1 = pnand %p2064_p10, %p2058_p7 }
  0x65   : > { %2068 = shalt.err (!%p2065_p1)
}
  0x66   : > { %1904 = dma.hbm_to_vmem [thread:$0]  (!%p2351_p2), %s2757_s7, 2048, %s353_s29, [#allocation9], %s2207_s23, %s2207_s23, %s2208_s30  }
  0x67   : > { %p1355_p4 = scmp.ge.s32.totalorder %s2203_s20, 4 }
  0x68   : > { %p2790_p3 = scmp.ne.s32.totalorder (!%p1355_p4), %s2780_s27, 0 }
  0x69   : > { %371 = sbr.rel (%p1355_p4) target bundleno = 184 (0xb8), region = 48 }
  0x70   : > { %374 = sbr.rel (!%p2790_p3) target bundleno = 147 (0x93), region = 52  ;;  %s375_s13 = sand.u32 (%p2790_p3), 1, %s2199_s19  }
  0x71   : > { %s1357_s10 = sshll.u32 (%p2790_p3), %s2203_s20, 1  ;;  %s1356_s11 = sshll.u32 (%p2790_p3), %s375_s13, 5 }
  0x72   : > { %s381_s17 = ssub.s32 (%p2790_p3), 7, %s1357_s10  ;;  %s2439_s25 = scalar_lea.sflag (%p2790_p3), [#allocation3], %s375_s13 }
  0x73   : > { %p382_p5 = scmp.lt.s32.totalorder (%p2790_p3), %s381_s17, 2  ;;  %s379_s23 = scalar_lea.vmem (%p2790_p3), [#allocation2], %s1356_s11 }
  0x77   : > { %s2812_s17 = smov (!%p382_p5, %s381_s17), 2 }
  0x78   : > { %s2436_s15 = sshll.u32 %s2812_s17, 8 }
  0x79   : > { %s387_s26 = ssub.s32 512, %s2436_s15 }
  0x7a   : > { %388 = vsyncadd %s2439_s25, %s387_s26  ;;  %p1360_p2 = scmp.ne.s32.totalorder %s2436_s15, 0  ;;  %s1394_s30 = sshll.u32 %s2203_s20, 9 }
  0x7b   : > { %s2447_s24 = scalar_lea.hbm %s2750_s0, %s1394_s30  ;;  %s394_s14 = sshll.u32 %s379_s23, 4  ;;  %s2449_s14 = int_to_ptr.vmem [resolvable:$true] %s394_s14 }
  0x7c   : > { %s2069_s22 = scalar_lea.hbm %s2447_s24, %s2436_s15  ;;  %s2073_s13 = scalar_lea.hbm %s2750_s0, 1792 }
  0x7d   : > { %p2070_p6 = scmp.ne.s32.totalorder %s2447_s24, %s2069_s22  ;;  %p2074_p13 = scmp.lt.u32.totalorder %s2447_s24, %s2750_s0 }
  0x7e   : > { %p2075_p0 = scmp.lt.u32.totalorder %s2073_s13, %s2069_s22  ;;  %p2077_p8 = scmp.lt.u32.totalorder %s2069_s22, %s2447_s24 }
  0x7f   : > { %p2071_p11 = pnand %p2070_p6, %p1360_p2 }
  0x80   : > { %p2076_p7 = por %p2075_p0, %p2074_p13 }
  0x81   : > { %p2072_p12 = pneg %p2071_p11 }
  0x82   : > { %p2078_p9 = por %p2077_p8, %p2076_p7 }
  0x84   : > { %p2079_p10 = pnand %p2078_p9, %p2072_p12 }
  0x86   : > { %2082 = shalt.err (!%p2079_p10)
}
  0x87   : > { %s2083_s17 = scalar_lea.vmem %s2449_s14, %s2436_s15  ;;  %s2210_s26 = smov [#allocation2]  }
  0x88   : > { %p2084_p1 = scmp.ne.s32.totalorder %s2449_s14, %s2083_s17  ;;  %s2087_s23 = sshll.u32 %s2210_s26, 4  ;;  %s2088_s23 = int_to_ptr.vmem [resolvable:$false] %s2087_s23 }
  0x89   : > { %s2089_s30 = scalar_lea.vmem %s2088_s23, 1024  ;;  %p2090_p5 = scmp.lt.s32.totalorder %s2449_s14, %s2088_s23 }
  0x8a   : > { %p2085_p4 = pnand %p2084_p1, %p1360_p2  ;;  %p2091_p6 = scmp.lt.s32.totalorder %s2089_s30, %s2083_s17 }
  0x8c   : > { %p2086_p3 = pneg %p2085_p4  ;;  %p2092_p11 = por %p2091_p6, %p2090_p5 }
  0x8e   : > { %p2093_p13 = pnand %p2092_p11, %p2086_p3 }
  0x90   : > { %2096 = shalt.err (!%p2093_p13)
}
  0x91   : > { %s2211_s29 = smov 256   ;;  %s2212_s16 = smov 16  }
  0x92   : > { %400 = dma.hbm_to_vmem [thread:$0]  (%p1360_p2), %s2447_s24, %s2436_s15, %s2449_s14, %s2439_s25, %s2211_s29, %s2211_s29, %s2212_s16  }
  0x93 PF: > { %p2791_p12 = scmp.ne.s32.totalorder %s2780_s27, 0 }
  0x94   : > { %s404_s22 = sand.u32 (%p2791_p12), 1, %s2203_s20   ;;  %s406_s5 = sand.u32 (%p2791_p12), 1, %s2199_s19  }
  0x95   : > { %403 = sbr.rel (!%p2791_p12) target bundleno = 184 (0xb8), region = 56  ;;  %s1365_s8 = sshll.u32 (%p2791_p12), %s406_s5, 5 }
  0x96   : > { %s1366_s13 = sshll.u32 (%p2791_p12), %s2203_s20, 1  ;;  %s2484_s26 = scalar_lea.sflag (%p2791_p12), [#allocation6], %s404_s22 }
  0x97   : > { %s410_s10 = ssub.s32 (%p2791_p12), 7, %s1366_s13  ;;  %s408_s15 = scalar_lea.vmem (%p2791_p12), [#allocation5], %s1365_s8 }
  0x98   : > { %p411_p0 = scmp.lt.s32.totalorder (%p2791_p12), %s410_s10, 2 }
  0x9c   : > { %s2814_s10 = smov (!%p411_p0, %s410_s10), 2 }
  0x9d   : > { %s2481_s11 = sshll.u32 %s2814_s10, 8 }
  0x9e   : > { %s416_s17 = ssub.s32 512, %s2481_s11 }
  0x9f   : > { %417 = vsyncadd %s2484_s26, %s416_s17  ;;  %p1369_p2 = scmp.ne.s32.totalorder %s2481_s11, 0  ;;  %s1397_s27 = sshll.u32 %s2203_s20, 9 }
  0xa0   : > { %s2492_s14 = scalar_lea.hbm %s2751_s1, %s1397_s27  ;;  %s423_s23 = sshll.u32 %s408_s15, 4  ;;  %s2494_s23 = int_to_ptr.vmem [resolvable:$true] %s423_s23 }
  0xa1   : > { %s2097_s30 = scalar_lea.hbm %s2492_s14, %s2481_s11  ;;  %s2101_s22 = scalar_lea.hbm %s2751_s1, 1792 }
  0xa2   : > { %p2098_p7 = scmp.ne.s32.totalorder %s2492_s14, %s2097_s30  ;;  %p2102_p10 = scmp.lt.u32.totalorder %s2492_s14, %s2751_s1 }
  0xa3   : > { %p2103_p1 = scmp.lt.u32.totalorder %s2101_s22, %s2097_s30  ;;  %p2105_p3 = scmp.lt.u32.totalorder %s2097_s30, %s2492_s14 }
  0xa4   : > { %p2099_p8 = pnand %p2098_p7, %p1369_p2 }
  0xa5   : > { %p2104_p4 = por %p2103_p1, %p2102_p10 }
  0xa6   : > { %p2100_p9 = pneg %p2099_p8 }
  0xa7   : > { %p2106_p5 = por %p2105_p3, %p2104_p4 }
  0xa9   : > { %p2107_p6 = pnand %p2106_p5, %p2100_p9 }
  0xab   : > { %2110 = shalt.err (!%p2107_p6)
}
  0xac   : > { %s2111_s13 = scalar_lea.vmem %s2494_s23, %s2481_s11  ;;  %s2213_s10 = smov [#allocation5]  }
  0xad   : > { %p2112_p11 = scmp.ne.s32.totalorder %s2494_s23, %s2111_s13  ;;  %s2115_s17 = sshll.u32 %s2213_s10, 4  ;;  %s2116_s17 = int_to_ptr.vmem [resolvable:$false] %s2115_s17 }
  0xae   : > { %s2117_s15 = scalar_lea.vmem %s2116_s17, 1024  ;;  %p2118_p0 = scmp.lt.s32.totalorder %s2494_s23, %s2116_s17 }
  0xaf   : > { %p2113_p13 = pnand %p2112_p11, %p1369_p2  ;;  %p2119_p7 = scmp.lt.s32.totalorder %s2117_s15, %s2111_s13 }
  0xb1   : > { %p2114_p12 = pneg %p2113_p13  ;;  %p2120_p8 = por %p2119_p7, %p2118_p0 }
  0xb3   : > { %p2121_p10 = pnand %p2120_p8, %p2114_p12 }
  0xb5   : > { %2124 = shalt.err (!%p2121_p10)
}
  0xb6   : > { %s2214_s27 = smov 256   ;;  %s2215_s25 = smov 16  }
  0xb7   : > { %429 = dma.hbm_to_vmem [thread:$0]  (%p1369_p2), %s2492_s14, %s2481_s11, %s2494_s23, %s2484_s26, %s2214_s27, %s2214_s27, %s2215_s25  }
  0xb8 PF: > { %p2792_p9 = scmp.ne.s32.totalorder %s2786_s12, 0 }
  0xb9   : > { %s2524_s24 = sand.u32 (!%p2792_p9), 1, %s2195_s18   ;;  %p2793_p1 = scmp.ne.s32.totalorder (!%p2792_p9), %s2781_s28, 0 }
  0xba   : > { %452 = sbr.rel (%p2792_p9) target bundleno = 1203 (0x4b3), region = 64  ;;  %s1375_s30 = sshll.u32 (!%p2792_p9), %s2524_s24, 5 }
  0xbb   : > { %s455_s29 = scalar_lea.sflag (!%p2792_p9), [#allocation3], %s2524_s24  ;;  %s2528_s16 = scalar_lea.vmem (!%p2792_p9), [#allocation2], %s1375_s30 }
  0xc1   : > { %2170 = dma.done.wait (%p2793_p1), %s455_s29, 512  }
  0xc2   : > { %2172 = vsyncadd (%p2793_p1), %s455_s29, 4294966784  ;;  %s463_s11 = sand.u32 1, %s2304_s21   ;;  %s2535_s26 = scalar_lea.vmem [#allocation5], %s1375_s30 }
  0xc3   : > { %s464_s12 = scalar_lea.sflag [#allocation6], %s463_s11 }
  0xc4   : > { %2174 = dma.done.wait (%p2793_p1), %s464_s12, 512  }
  0xc5   : > { %2176 = vsyncadd (%p2793_p1), %s464_s12, 4294966784  ;;  %p2794_p2 = scmp.eq.s32.totalorder %s2304_s21, 0 }
  0xc7   : > { %2178 = dma.done.wait (%p2794_p2), [#allocation6], 4096   ;;  %p2795_p4 = pmov %p2794_p2 }
  0xc8   : > { %p2796_p3 = pmov %p2794_p2 }
  0xc9   : > { %2180 = vsyncadd (%p2795_p4), [#allocation6], 4294963200 }
  0xca   : > { %2182 = dma.done.wait (%p2796_p3), [#allocation9], 4096   ;;  %p2797_p5 = pmov %p2794_p2 }
  0xcb   : > { %v579_v0 = vld [vmem:[#allocation7 + $0x80] sm:$0xff]  ;;  %v580_v1 = vld [vmem:[#allocation7 + $0x88] sm:$0xff]  ;;  %v581_v5 = vld [vmem:[#allocation7 + $0x90] sm:$0xff]  ;;  %s1381_s5 = sshll.u32 %s2304_s21, 1  ;;  %s2798_s29 = sld [smem:[#allocation24_spill]] }
  0xcc   : > { %2184 = vsyncadd (%p2797_p5), [#allocation9], 4294963200  ;;  %v563_v2 = vld [vmem:[#allocation7] sm:$0xff]  ;;  %v2549_v3 = vpack.c.bf16 %v580_v1, %v579_v0  ;;  %v564_v4 = vld [vmem:[#allocation7 + $0x8] sm:$0xff]  ;;  %p549_p6 = scmp.lt.s32.totalorder %s1381_s5, 6  ;;  %s2799_s12 = sld [smem:[#allocation23_spill]] }
  0xcd   : > { %v582_v6 = vld [vmem:[#allocation7 + $0x98] sm:$0xff]  ;;  %v2551_v7 = vpack.c.bf16 %v564_v4, %v563_v2  ;;  %v565_v9 = vld [vmem:[#allocation7 + $0x10] sm:$0xff]  ;;  %v583_v11 = vld [vmem:[#allocation7 + $0xa0] sm:$0xff]  ;;  %s2800_s28 = sld [smem:[#allocation20_spill]]  ;;  %s1398_s14 = sshll.u32 %s2304_s21, 8 }
  0xce   : > { %v2553_v8 = vpack.c.bf16 %v582_v6, %v581_v5  ;;  %v566_v10 = vld [vmem:[#allocation7 + $0x18] sm:$0xff]  ;;  %1688 = vmatprep.subr.bf16.mxu0 %v2549_v3  ;;  %v584_v12 = vld [vmem:[#allocation7 + $0xa8] sm:$0xff]  ;;  %v567_v15 = vld [vmem:[#allocation7 + $0x20] sm:$0xff]  ;;  %s2816_s5 = smov (!%p549_p6, %s1381_s5), 6  ;;  %s2801_s13 = sld [smem:[#allocation25_spill]] }
  0xcf   : > { %1690 = vmatpush3.bf16.msra.mxu0 %v2551_v7  ;;  %v2557_v13 = vpack.c.bf16 %v566_v10, %v565_v9  ;;  %v2560_v14 = vpack.c.bf16 %v584_v12, %v583_v11  ;;  %v568_v16 = vld [vmem:[#allocation7 + $0x28] sm:$0xff]  ;;  %v585_v17 = vld [vmem:[#allocation7 + $0xb0] sm:$0xff]  ;;  %v586_v18 = vld [vmem:[#allocation7 + $0xb8] sm:$0xff]  ;;  %s1382_s8 = sshll.u32 %s2816_s5, 3  ;;  %s2220_s15 = smov [#allocation11]  }
  0xd0   : > { %1692 = vmatprep.subr.bf16.mxu0 %v2553_v8  ;;  %v2563_v19 = vpack.c.bf16 %v568_v16, %v567_v15  ;;  %v2566_v20 = vpack.c.bf16 %v586_v18, %v585_v17  ;;  %v569_v21 = vld [vmem:[#allocation7 + $0x30] sm:$0xff]  ;;  %v570_v22 = vld [vmem:[#allocation7 + $0x38] sm:$0xff]  ;;  %v587_v23 = vld [vmem:[#allocation7 + $0xc0] sm:$0xff]  ;;  %s552_s17 = scalar_lea.vmem %s2752_s2, %s1382_s8  ;;  %s2129_s27 = sshll.u32 %s2220_s15, 4  ;;  %s2130_s27 = int_to_ptr.vmem [resolvable:$false] %s2129_s27 }
  0xd1   : > { %v588_v24 = vld [vmem:[#allocation7 + $0xc8] sm:$0xff]  ;;  %v571_v26 = vld [vmem:[#allocation7 + $0x40] sm:$0xff]  ;;  %v2570_v27 = vpack.c.bf16 %v570_v22, %v569_v21  ;;  %v681_v30 = vld [vmem:[#allocation8 + $0x10] sm:$0xff]  ;;  %s2131_s25 = scalar_lea.vmem %s2130_s27, 512 }
  0xd2   : > { %v560_v25 = vld [vmem:[%s2528_s16 + $0x8] sm:$0xff]  ;;  %v679_v28 = vld [vmem:[#allocation8] sm:$0xff]  ;;  %v2573_v31 = vpack.c.bf16 %v588_v24, %v587_v23  ;;  %v589_v33 = vld [vmem:[#allocation7 + $0xd0] sm:$0xff] }
  0xd3   : > { %1694 = vmatpush3.bf16.msra.mxu0 %v2557_v13  ;;  %666 = vmatprep.mubr.f32.mxu0 %v560_v25  ;;  %v680_v29 = vld [vmem:[#allocation8 + $0x8] sm:$0xff]  ;;  %v682_v35 = vld [vmem:[#allocation8 + $0x18] sm:$0xff]  ;;  %v683_v38 = vld [vmem:[#allocation8 + $0x20] sm:$0xff]  ;;  %p2802_p13 = scmp.ne.s32.totalorder %s2800_s28, 0 }
  0xd4   : > { %1696 = vmatprep.subr.bf16.mxu0 %v2560_v14  ;;  %v572_v32 = vld [vmem:[#allocation7 + $0x48] sm:$0xff]  ;;  %v2575_v34 = vpack.c.bf16 %v680_v29, %v679_v28  ;;  %v590_v36 = vld [vmem:[#allocation7 + $0xd8] sm:$0xff]  ;;  %v2577_v37 = vpack.c.bf16 %v682_v35, %v681_v30  ;;  %v573_v42 = vld [vmem:[#allocation7 + $0x50] sm:$0xff]  ;;  %s2705_s10 = scalar_lea.hbm %s2801_s13, %s1398_s14 }
  0xd5   : > { %v684_v39 = vld [vmem:[#allocation8 + $0x28] sm:$0xff]  ;;  %v2581_v40 = vpack.c.bf16 %v572_v32, %v571_v26  ;;  %v2585_v41 = vpack.c.bf16 %v590_v36, %v589_v33  ;;  %v574_v43 = vld [vmem:[#allocation7 + $0x58] sm:$0xff]  ;;  %v591_v45 = vld [vmem:[#allocation7 + $0xe0] sm:$0xff] }
  0xd6   : > { %1720 = vmatprep.subr.bf16.mxu1 %v2575_v34  ;;  %v2588_v44 = vpack.c.bf16 %v684_v39, %v683_v38  ;;  %v592_v46 = vld [vmem:[#allocation7 + $0xe8] sm:$0xff]  ;;  %v2591_v47 = vpack.c.bf16 %v574_v43, %v573_v42  ;;  %v575_v49 = vld [vmem:[#allocation7 + $0x60] sm:$0xff]  ;;  %v593_v51 = vld [vmem:[#allocation7 + $0xf0] sm:$0xff] }
  0xd7   : > { %1698 = vmatpush3.bf16.msra.mxu0 %v2563_v19  ;;  %1722 = vmatpush3.bf16.msra.mxu1 %v2575_v34  ;;  %v2595_v48 = vpack.c.bf16 %v592_v46, %v591_v45  ;;  %v576_v50 = vld [vmem:[#allocation7 + $0x68] sm:$0xff]  ;;  %v594_v52 = vld [vmem:[#allocation7 + $0xf8] sm:$0xff]  ;;  %v577_v55 = vld [vmem:[#allocation7 + $0x70] sm:$0xff] }
  0xd8   : > { %1700 = vmatprep.subr.bf16.mxu0 %v2566_v20  ;;  %1724 = vmatprep.subr.bf16.mxu1 %v2577_v37  ;;  %v2599_v53 = vpack.c.bf16 %v576_v50, %v575_v49  ;;  %v2603_v54 = vpack.c.bf16 %v594_v52, %v593_v51  ;;  %v578_v56 = vld [vmem:[#allocation7 + $0x78] sm:$0xff]  ;;  %v559_v58 = vld [vmem:[%s2528_s16] sm:$0xff]  ;;  %v561_v60 = vld [vmem:[%s2528_s16 + $0x10] sm:$0xff] }
  0xd9   : > { %v2606_v57 = vpack.c.bf16 %v578_v56, %v577_v55  ;;  %v562_v59 = vld [vmem:[%s2528_s16 + $0x18] sm:$0xff]  ;;  %v685_v61 = vld [vmem:[#allocation8 + $0x30] sm:$0xff]  ;;  %v687_v0 = vld [vmem:[#allocation8 + $0x40] sm:$0xff] }
  0xda   : > { %v686_v62 = vld [vmem:[#allocation8 + $0x38] sm:$0xff]  ;;  %v688_v1 = vld [vmem:[#allocation8 + $0x48] sm:$0xff]  ;;  %v689_v4 = vld [vmem:[#allocation8 + $0x50] sm:$0xff] }
  0xdb   : > { %1702 = vmatpush3.bf16.msra.mxu0 %v2570_v27  ;;  %1726 = vmatpush3.bf16.msra.mxu1 %v2577_v37  ;;  %v2613_v63 = vpack.c.bf16 %v686_v62, %v685_v61  ;;  %v2617_v2 = vpack.c.bf16 %v688_v1, %v687_v0  ;;  %v690_v5 = vld [vmem:[#allocation8 + $0x58] sm:$0xff]  ;;  %v691_v9 = vld [vmem:[#allocation8 + $0x60] sm:$0xff]  ;;  %v692_v10 = vld [vmem:[#allocation8 + $0x68] sm:$0xff] }
  0xdc   : > { %1704 = vmatprep.subr.bf16.mxu0 %v2573_v31  ;;  %1728 = vmatprep.subr.bf16.mxu1 %v2588_v44  ;;  %v2621_v6 = vpack.c.bf16 %v690_v5, %v689_v4  ;;  %v2625_v11 = vpack.c.bf16 %v692_v10, %v691_v9  ;;  %v693_v12 = vld [vmem:[#allocation8 + $0x70] sm:$0xff]  ;;  %v694_v15 = vld [vmem:[#allocation8 + $0x78] sm:$0xff]  ;;  %v779_v17 = vld [vmem:[#allocation10] sm:$0xff]  ;;  %v2216_v5 = vmov 1  }
  0xdd   : > { %v2627_v16 = vpack.c.bf16 %v694_v15, %v693_v12  ;;  %v780_v18 = vld [vmem:[#allocation10 + $0x8] sm:$0xff]  ;;  %v781_v21 = vld [vmem:[#allocation10 + $0x10] sm:$0xff]  ;;  %v782_v23 = vld [vmem:[#allocation10 + $0x18] sm:$0xff]  ;;  %1964 = vset.pattern.permute.xlu1 %v2216_v5  ;;  %v2219_v12 = vmov 3  }
  0xde   : > { %v1751_v22 = vpack.c.bf16 %v780_v18, %v779_v17  ;;  %v1755_v24 = vpack.c.bf16 %v782_v23, %v781_v21  ;;  %v783_v25 = vld [vmem:[#allocation10 + $0x20] sm:$0xff]  ;;  %v784_v26 = vld [vmem:[#allocation10 + $0x28] sm:$0xff]  ;;  %v785_v29 = vld [vmem:[#allocation10 + $0x30] sm:$0xff] }
  0xdf   : > { %1706 = vmatpush3.bf16.msra.mxu0 %v2581_v40  ;;  %1730 = vmatpush3.bf16.msra.mxu1 %v2588_v44  ;;  %v1759_v28 = vpack.c.bf16 %v784_v26, %v783_v25  ;;  %v786_v30 = vld [vmem:[#allocation10 + $0x38] sm:$0xff]  ;;  %v2637_v33 = vld [vmem:[%s2754_s4] ss:$0 sm:$0xff]  ;;  %v878_v49 = vld [vmem:[%s2535_s26 + $0x8] sm:$0xff]  ;;  %v1124_v25 = vlaneseq }
  0xe0   : > { %1708 = vmatprep.subr.bf16.mxu0 %v2585_v41  ;;  %1732 = vmatprep.subr.bf16.mxu1 %v2613_v63  ;;  %v1763_v32 = vpack.c.bf16 %v786_v30, %v785_v29  ;;  %v794_v52 = vld [vmem:[#allocation10 + $0x78] sm:$0xff]  ;;  %v1110_v9 = vld [vmem:[%s552_s17] sm:$0xff]  ;;  %v1111_v10 = vld [vmem:[%s552_s17 + $0x8] sm:$0xff]  ;;  %s1201_s17 = scalar_lea.sflag [#allocation4], %s2524_s24 }
  0xe1   : > { %1139 = vperm.xlu1 %1964, %v1110_v9   ;;  %v1125_v26 = vshrl.u32 %v1124_v25, 7 }
  0xe3   : > { %1710 = vmatpush3.bf16.msra.mxu0 %v2591_v47  ;;  %1734 = vmatpush3.bf16.msra.mxu1 %v2613_v63  ;;  %v1126_v30 = vsub.s32 0, %v1125_v26 }
  0xe4   : > { %1712 = vmatprep.subr.bf16.mxu0 %v2595_v48  ;;  %1736 = vmatprep.subr.bf16.mxu1 %v2617_v2 }
  0xe5   : > { %1143 = vperm.xlu1 %1964, %v1111_v10  }
  0xe7   : > { %1714 = vmatpush3.bf16.msra.mxu0 %v2599_v53  ;;  %1738 = vmatpush3.bf16.msra.mxu1 %v2617_v2 }
  0xe8   : > { %1716 = vmatprep.subr.bf16.mxu0 %v2603_v54  ;;  %1740 = vmatprep.subr.bf16.mxu1 %v2621_v6 }
  0xeb   : > { %1718 = vmatpush3.bf16.msra.mxu0 %v2606_v57  ;;  %1742 = vmatpush3.bf16.msra.mxu1 %v2621_v6 }
  0xec   : > { %1744 = vmatprep.subr.bf16.mxu1 %v2625_v11  ;;  %1752 = vmatprep.subr.bf16.mxu0 %v1751_v22 }
  0xee   : > { %667 = vmatmul.mubr.f32.vlgmr.msra.gmra.mrb[0].mxu0 %v559_v58 }
  0xef   : > { %671 = vmatprep.mubr.f32.mxu0 %v562_v59  ;;  %1746 = vmatpush3.bf16.msra.mxu1 %v2625_v11 }
  0xf0   : > { %1748 = vmatprep.subr.bf16.mxu1 %v2627_v16  ;;  %1754 = vmatpush3.bf16.msra.mxu0 %v1751_v22 }
  0xf1   : > { %1756 = vmatprep.subr.bf16.mxu0 %v1755_v24 }
  0xf2   : > { %672 = vmatmul.mubr.f32.gmra.mrb[2].mxu0 %v561_v60 }
  0xf3   : > { %1750 = vmatpush3.bf16.msra.mxu1 %v2627_v16 }
  0xf4   : > { %1784 = vmatprep.subr.bf16.mxu1 %v2549_v3  ;;  %1758 = vmatpush3.bf16.msra.mxu0 %v1755_v24 }
  0xf5   : > { %1760 = vmatprep.subr.bf16.mxu0 %v1759_v28 }
  0xf8   : > { %1762 = vmatpush3.bf16.msra.mxu0 %v1759_v28 }
  0xf9   : > { %1764 = vmatprep.subr.bf16.mxu0 %v1763_v32 }
  0xfc   : > { %1766 = vmatpush3.bf16.msra.mxu0 %v1763_v32 }
 0x160   : > { %v1140_v29 = vpop.permute.xlu1 %1139 }
 0x1c1   : > { %v1431_v3 = vpop.f32.mrb[0].mxu0 }
 0x1c2   : > { %v1432_v35 = vpop.f32.mrb[1].mxu0 }
 0x1c3   : > { %v1433_v36 = vadd.f32 %v1432_v35, %v1431_v3  ;;  %v1148_v3 = vsub.s32 1, %v1125_v26 }
 0x1c5   : > { %v669_v38 = vadd.f32 %v1433_v36, %v2637_v33  ;;  %v1434_v39 = vpop.f32.mrb[2].mxu0  ;;  %v1144_v36 = vpop.permute.xlu1 %1143 }
 0x1c6   : > { %v1435_v42 = vpop.f32.mrb[3].mxu0 }
 0x1c7   : > { %v1436_v43 = vadd.f32 %v1435_v42, %v1434_v39  ;;  %1969 = vtanh.f32 %v669_v38  ;;  %v1164_v42 = vsub.s32 2, %v1125_v26 }
 0x1c9   : > { %v674_v45 = vadd.f32 %v1436_v43, %v2637_v33  ;;  %v1386_v43 = vld [vmem:[%s2798_s29] ss:$0 sm:$0xff] }
 0x1cb   : > { %1971 = vtanh.f32 %v674_v45 }
 0x1d1   : > { %v1970_v46 = vpop.eup %1969 }
 0x1d2   : > { %1579 = vmatprep.mubr.f32.mxu1 %v1970_v46 }
 0x1d5   : > { %v1972_v50 = vpop.eup %1971 }
 0x1d6   : > { %1580 = vmatmul.mubr.f32.vlgmr.msra.gmra.mrb[0].mxu1 %v1972_v50 }
 0x1d7   : > { %1786 = vmatpush3.bf16.msra.mxu1 %v2551_v7  ;;  %945 = vmatprep.mubr.f32.mxu1 %v878_v49  ;;  %v877_v7 = vld [vmem:[%s2535_s26] sm:$0xff] }
 0x1d8   : > { %1788 = vmatprep.subr.bf16.mxu1 %v2553_v8  ;;  %v880_v8 = vld [vmem:[%s2535_s26 + $0x18] sm:$0xff] }
 0x1db   : > { %1790 = vmatpush3.bf16.msra.mxu1 %v2557_v13  ;;  %v879_v13 = vld [vmem:[%s2535_s26 + $0x10] sm:$0xff]  ;;  %s1380_s26 = sshll.u32 %s2524_s24, 4 }
 0x1dc   : > { %1792 = vmatprep.subr.bf16.mxu1 %v2560_v14  ;;  %v787_v14 = vld [vmem:[#allocation10 + $0x40] sm:$0xff]  ;;  %s531_s23 = scalar_lea.vmem [#allocation11], %s1380_s26 }
 0x1dd   : > { %s1214_s22 = sshll.u32 %s531_s23, 4  ;;  %s2707_s22 = int_to_ptr.vmem [resolvable:$true] %s1214_s22 }
 0x1de   : > { %s2125_s21 = scalar_lea.vmem %s2707_s22, 256  ;;  %p2132_p7 = scmp.lt.s32.totalorder %s2707_s22, %s2130_s27 }
 0x1df   : > { %1794 = vmatpush3.bf16.msra.mxu1 %v2563_v19  ;;  %v788_v19 = vld [vmem:[#allocation10 + $0x48] sm:$0xff]  ;;  %p2126_p11 = scmp.ne.s32.totalorder %s2707_s22, %s2125_s21  ;;  %p2133_p8 = scmp.lt.s32.totalorder %s2131_s25, %s2125_s21 }
 0x1e0   : > { %1796 = vmatprep.subr.bf16.mxu1 %v2566_v20  ;;  %v1767_v20 = vpack.c.bf16 %v788_v19, %v787_v14 }
 0x1e1   : > { %p2127_p12 = pnand %p2126_p11, %p2802_p13  ;;  %p2134_p10 = por %p2133_p8, %p2132_p7 }
 0x1e2   : > { %1768 = vmatprep.subr.bf16.mxu0 %v1767_v20 }
 0x1e3   : > { %1798 = vmatpush3.bf16.msra.mxu1 %v2570_v27  ;;  %1770 = vmatpush3.bf16.msra.mxu0 %v1767_v20  ;;  %v789_v27 = vld [vmem:[#allocation10 + $0x50] sm:$0xff]  ;;  %p2128_p0 = pneg %p2127_p12 }
 0x1e4   : > { %1800 = vmatprep.subr.bf16.mxu1 %v2573_v31  ;;  %v790_v31 = vld [vmem:[#allocation10 + $0x58] sm:$0xff] }
 0x1e5   : > { %p2135_p9 = pnand %p2134_p10, %p2128_p0 }
 0x1e7   : > { %1802 = vmatpush3.bf16.msra.mxu1 %v2581_v40  ;;  %v1771_v40 = vpack.c.bf16 %v790_v31, %v789_v27 }
 0x1e8   : > { %1804 = vmatprep.subr.bf16.mxu1 %v2585_v41  ;;  %v791_v41 = vld [vmem:[#allocation10 + $0x60] sm:$0xff] }
 0x1e9   : > { %1772 = vmatprep.subr.bf16.mxu0 %v1771_v40 }
 0x1ea   : > { %1774 = vmatpush3.bf16.msra.mxu0 %v1771_v40 }
 0x1eb   : > { %1806 = vmatpush3.bf16.msra.mxu1 %v2591_v47  ;;  %v792_v47 = vld [vmem:[#allocation10 + $0x68] sm:$0xff] }
 0x1ec   : > { %1808 = vmatprep.subr.bf16.mxu1 %v2595_v48  ;;  %v793_v48 = vld [vmem:[#allocation10 + $0x70] sm:$0xff]  ;;  %v1775_v51 = vpack.c.bf16 %v792_v47, %v791_v41 }
 0x1ee   : > { %1776 = vmatprep.subr.bf16.mxu0 %v1775_v51 }
 0x1ef   : > { %1810 = vmatpush3.bf16.msra.mxu1 %v2599_v53  ;;  %v1779_v53 = vpack.c.bf16 %v794_v52, %v793_v48  ;;  %1778 = vmatpush3.bf16.msra.mxu0 %v1775_v51 }
 0x1f0   : > { %1812 = vmatprep.subr.bf16.mxu1 %v2603_v54  ;;  %v2664_v54 = vld [vmem:[%s2756_s6] ss:$0 sm:$0xff] }
 0x1f1   : > { %1780 = vmatprep.subr.bf16.mxu0 %v1779_v53 }
 0x1f3   : > { %1814 = vmatpush3.bf16.msra.mxu1 %v2606_v57  ;;  %1782 = vmatpush3.bf16.msra.mxu0 %v1779_v53 }
 0x1f4   : > { %1848 = vmatprep.subr.bf16.mxu1 %v1751_v22  ;;  %1816 = vmatprep.subr.bf16.mxu0 %v2575_v34 }
 0x1f6   : > { %946 = vmatmul.mubr.f32.vlgmr.msra.gmra.mrb[2].mxu1 %v877_v7 }
 0x1f7   : > { %950 = vmatprep.mubr.f32.mxu1 %v880_v8  ;;  %1850 = vmatpush3.bf16.msra.mxu1 %v1751_v22 }
 0x1f8   : > { %1852 = vmatprep.subr.bf16.mxu1 %v1755_v24 }
 0x1fa   : > { %951 = vmatmul.mubr.f32.gmra.mrb[4].mxu1 %v879_v13  ;;  %v1180_v13 = vsub.s32 3, %v1125_v26 }
 0x1fb   : > { %1854 = vmatpush3.bf16.msra.mxu1 %v1755_v24 }
 0x1fc   : > { %1856 = vmatprep.subr.bf16.mxu1 %v1759_v28 }
 0x1ff   : > { %1858 = vmatpush3.bf16.msra.mxu1 %v1759_v28 }
 0x200   : > { %1860 = vmatprep.subr.bf16.mxu1 %v1763_v32 }
 0x203   : > { %1862 = vmatpush3.bf16.msra.mxu1 %v1763_v32  ;;  %v1112_v32 = vld [vmem:[%s2759_s9] sm:$0xf] }
 0x204   : > { %1864 = vmatprep.subr.bf16.mxu1 %v1767_v20  ;;  %v1149_v38 = vrot.slane %v1112_v32, %v1148_v3  ;;  %v1165_v7 = vrot.slane %v1112_v32, %v1164_v42  ;;  %v1181_v31 = vrot.slane %v1112_v32, %v1180_v13 }
 0x206   : > { %v1151_v49 = vmul.f32 %v1149_v38, %v1144_v36  ;;  %v1150_v14 = vmul.f32 %v1149_v38, %v1140_v29 }
 0x207   : > { %1866 = vmatpush3.bf16.msra.mxu1 %v1767_v20 }
 0x208   : > { %1868 = vmatprep.subr.bf16.mxu1 %v1771_v40 }
 0x20b   : > { %1870 = vmatpush3.bf16.msra.mxu1 %v1771_v40 }
 0x20c   : > { %1872 = vmatprep.subr.bf16.mxu1 %v1775_v51 }
 0x20f   : > { %1874 = vmatpush3.bf16.msra.mxu1 %v1775_v51 }
 0x210   : > { %1876 = vmatprep.subr.bf16.mxu1 %v1779_v53 }
 0x213   : > { %1878 = vmatpush3.bf16.msra.mxu1 %v1779_v53 }
 0x2a9   : > { %v1581_v55 = vpop.f32.mrb[0].mxu1 }
 0x2aa   : > { %v774_v56 = vadd.f32 %v1581_v55, %v2664_v54  ;;  %v768_v57 = vpop.f32.mrb[1].mxu1  ;;  %v1385_v55 = vld [vmem:[%s2799_s12] ss:$0 sm:$0xff] }
 0x2ab   : > { %v769_v58 = vadd.f32 %v2664_v54, %v768_v57 }
 0x2ad   : > { %1973 = vtanh.f32 %v769_v58 }
 0x2ae   : > { %1975 = vtanh.f32 %v774_v56 }
 0x2b7   : > { %v1974_v59 = vpop.eup %1973 }
 0x2b8   : > { %v1976_v60 = vpop.eup %1975  ;;  %1614 = vmatprep.mubr.f32.mxu0 %v1974_v59 }
 0x2b9   : > { %1615 = vmatmul.mubr.f32.vlgmr.msra.gmra.mrb[4].mxu0 %v1976_v60 }
 0x2ba   : > { %1818 = vmatpush3.bf16.msra.mxu0 %v2575_v34 }
 0x2bb   : > { %1820 = vmatprep.subr.bf16.mxu0 %v2577_v37 }
 0x2be   : > { %1822 = vmatpush3.bf16.msra.mxu0 %v2577_v37 }
 0x2bf   : > { %1824 = vmatprep.subr.bf16.mxu0 %v2588_v44 }
 0x2c2   : > { %1826 = vmatpush3.bf16.msra.mxu0 %v2588_v44 }
 0x2c3   : > { %1828 = vmatprep.subr.bf16.mxu0 %v2613_v63 }
 0x2c6   : > { %1830 = vmatpush3.bf16.msra.mxu0 %v2613_v63 }
 0x2c7   : > { %1832 = vmatprep.subr.bf16.mxu0 %v2617_v2 }
 0x2c9   : > { %v1505_v61 = vpop.f32.mrb[2].mxu1 }
 0x2ca   : > { %v1506_v62 = vpop.f32.mrb[3].mxu1  ;;  %1834 = vmatpush3.bf16.msra.mxu0 %v2617_v2 }
 0x2cb   : > { %v1507_v0 = vadd.f32 %v1506_v62, %v1505_v61  ;;  %1836 = vmatprep.subr.bf16.mxu0 %v2621_v6 }
 0x2cd   : > { %v948_v34 = vadd.f32 %v1507_v0, %v2637_v33  ;;  %v1508_v37 = vpop.f32.mrb[4].mxu1 }
 0x2ce   : > { %v1509_v1 = vpop.f32.mrb[5].mxu1  ;;  %1838 = vmatpush3.bf16.msra.mxu0 %v2621_v6  ;;  %v2217_v6 = vmov 0  }
 0x2cf   : > { %1977 = vtanh.f32 %v948_v34  ;;  %v1510_v44 = vadd.f32 %v1509_v1, %v1508_v37  ;;  %1840 = vmatprep.subr.bf16.mxu0 %v2625_v11  ;;  %1963 = vset.pattern.permute.xlu0 %v2217_v6 }
 0x2d0   : > { %1116 = vperm.xlu0 %1963, %v1110_v9  }
 0x2d1   : > { %v953_v63 = vadd.f32 %v1510_v44, %v2637_v33  ;;  %v1127_v33 = vrot.slane %v1112_v32, %v1126_v30 }
 0x2d2   : > { %1842 = vmatpush3.bf16.msra.mxu0 %v2625_v11  ;;  %v2218_v11 = vmov 2  }
 0x2d3   : > { %1979 = vtanh.f32 %v953_v63  ;;  %1844 = vmatprep.subr.bf16.mxu0 %v2627_v16  ;;  %1966 = vset.pattern.permute.xlu1 %v2218_v11 }
 0x2d4   : > { %1121 = vperm.xlu0 %1963, %v1111_v10   ;;  %1159 = vperm.xlu1 %1966, %v1111_v10  }
 0x2d6   : > { %1846 = vmatpush3.bf16.msra.mxu0 %v2627_v16 }
 0x2d8   : > { %1965 = vset.pattern.permute.xlu0 %v2218_v11  ;;  %1967 = vset.pattern.permute.xlu1 %v2219_v12 }
 0x2d9   : > { %v1978_v2 = vpop.eup %1977  ;;  %1155 = vperm.xlu0 %1965, %v1110_v9   ;;  %1171 = vperm.xlu1 %1967, %v1110_v9  }
 0x2da   : > { %1649 = vmatprep.mubr.f32.mxu0 %v1978_v2 }
 0x2dd   : > { %v1980_v4 = vpop.eup %1979  ;;  %1968 = vset.pattern.permute.xlu0 %v2219_v12 }
 0x2de   : > { %1650 = vmatmul.mubr.f32.vlgmr.msra.gmra.mrb[6].mxu0 %v1980_v4  ;;  %1175 = vperm.xlu0 %1968, %v1111_v10  }
 0x34f   : > { %v1117_v28 = vpop.permute.xlu0 %1116 }
 0x350   : > { %v1128_v45 = vmul.f32 %v1127_v33, %v1117_v28 }
 0x352   : > { %v1136_v19 = vadd.f32 %v1386_v43, %v1128_v45 }
 0x353   : > { %v1122_v35 = vpop.permute.xlu0 %1121  ;;  %v1160_v8 = vpop.permute.xlu1 %1159 }
 0x354   : > { %v1129_v39 = vmul.f32 %v1127_v33, %v1122_v35  ;;  %v1167_v27 = vmul.f32 %v1165_v7, %v1160_v8  ;;  %v1152_v40 = vadd.f32 %v1150_v14, %v1136_v19 }
 0x356   : > { %v1137_v50 = vadd.f32 %v1386_v43, %v1129_v39 }
 0x358   : > { %v1156_v46 = vpop.permute.xlu0 %1155  ;;  %v1153_v20 = vadd.f32 %v1151_v49, %v1137_v50  ;;  %v1172_v48 = vpop.permute.xlu1 %1171 }
 0x359   : > { %v1166_v41 = vmul.f32 %v1165_v7, %v1156_v46 }
 0x35a   : > { %v1169_v51 = vadd.f32 %v1167_v27, %v1153_v20 }
 0x35b   : > { %v1168_v53 = vadd.f32 %v1166_v41, %v1152_v40 }
 0x35d   : > { %v1176_v47 = vpop.permute.xlu0 %1175 }
 0x35e   : > { %v1183_v52 = vmul.f32 %v1181_v31, %v1176_v47 }
 0x360   : > { %v1185_v57 = vadd.f32 %v1183_v52, %v1169_v51 }
 0x38c   : > { %v1616_v15 = vpop.f32.mrb[4].mxu0 }
 0x38d   : > { %v868_v16 = vpop.f32.mrb[5].mxu0  ;;  %v874_v1 = vadd.f32 %v1616_v15, %v1385_v55 }
 0x38e   : > { %v869_v63 = vadd.f32 %v1385_v55, %v868_v16 }
 0x3b1   : > { %v1651_v17 = vpop.f32.mrb[6].mxu0 }
 0x3b2   : > { %v1030_v18 = vadd.f32 %v1651_v17, %v2664_v54  ;;  %v1024_v21 = vpop.f32.mrb[7].mxu0 }
 0x3b3   : > { %v1025_v22 = vadd.f32 %v2664_v54, %v1024_v21  ;;  %v1182_v54 = vmul.f32 %v1181_v31, %v1172_v48 }
 0x3b5   : > { %1981 = vtanh.f32 %v1025_v22  ;;  %v1184_v60 = vadd.f32 %v1182_v54, %v1168_v53 }
 0x3b6   : > { %1983 = vtanh.f32 %v1030_v18 }
 0x3bf   : > { %v1982_v23 = vpop.eup %1981 }
 0x3c0   : > { %v1984_v24 = vpop.eup %1983  ;;  %1684 = vmatprep.mubr.f32.mxu1 %v1982_v23 }
 0x3c1   : > { %1685 = vmatmul.mubr.f32.vlgmr.msra.gmra.mrb[6].mxu1 %v1984_v24 }
 0x494   : > { %v1686_v56 = vpop.f32.mrb[6].mxu1 }
 0x495   : > { %v1107_v58 = vadd.f32 %v1686_v56, %v1385_v55  ;;  %v1101_v59 = vpop.f32.mrb[7].mxu1 }
 0x496   : > { %v1102_v61 = vadd.f32 %v1385_v55, %v1101_v59 }
 0x497   : > { %v1187_v62 = vsub.f32 %v1185_v57, %v1107_v58 }
 0x498   : > { %v1186_v0 = vsub.f32 %v1184_v60, %v1102_v61 }
 0x499   : > { %v1189_v34 = vmul.f32 0.6, %v1187_v62 }
 0x49a   : > { %v1188_v37 = vmul.f32 0.6, %v1186_v0 }
 0x49b   : > { %v1191_v44 = vadd.f32 %v1189_v34, %v1107_v58 }
 0x49c   : > { %v1190_v2 = vadd.f32 %v1188_v37, %v1102_v61 }
 0x49d   : > { %v1193_v4 = vsub.f32 %v1191_v44, %v874_v1 }
 0x49e   : > { %v1192_v5 = vsub.f32 %v1190_v2, %v869_v63 }
 0x49f   : > { %v1195_v6 = vmul.f32 0.3, %v1193_v4 }
 0x4a0   : > { %v1194_v9 = vmul.f32 0.3, %v1192_v5 }
 0x4a1   : > { %v1197_v10 = vadd.f32 %v1195_v6, %v874_v1 }
 0x4a2   : > { %v1196_v11 = vadd.f32 %v1194_v9, %v869_v63 }
 0x4a3   : > { %1199 = vst [vmem:[%s531_s23 + $0x8] sm:$0xff] %v1197_v10 }
 0x4a4   : > { %1198 = vst [vmem:[%s531_s23] sm:$0xff] %v1196_v11 }
 0x4a5   : > { %2138 = shalt.err (!%p2135_p9)
}
 0x4a6   : > { %s2139_s30 = scalar_lea.hbm %s2705_s10, 256  ;;  %s2143_s11 = scalar_lea.hbm %s2801_s13, 1024 }
 0x4a7   : > { %p2140_p1 = scmp.ne.s32.totalorder %s2705_s10, %s2139_s30  ;;  %p2144_p3 = scmp.lt.u32.totalorder %s2705_s10, %s2801_s13 }
 0x4a8   : > { %p2145_p5 = scmp.lt.u32.totalorder %s2143_s11, %s2139_s30  ;;  %p2147_p11 = scmp.lt.u32.totalorder %s2139_s30, %s2705_s10 }
 0x4a9   : > { %p2141_p2 = pnand %p2140_p1, %p2802_p13 }
 0x4aa   : > { %p2146_p6 = por %p2145_p5, %p2144_p3 }
 0x4ab   : > { %p2142_p4 = pneg %p2141_p2 }
 0x4ac   : > { %p2148_p12 = por %p2147_p11, %p2146_p6 }
 0x4ae   : > { %p2149_p0 = pnand %p2148_p12, %p2142_p4 }
 0x4b0   : > { %2152 = shalt.err (!%p2149_p0)
}
 0x4b1   : > { %s2221_s14 = smov 128   ;;  %s2222_s23 = smov 8  }
 0x4b2   : > { %1893 = dma.vmem_to_hbm [thread:$0]  (%p2802_p13), %s2707_s22, 256, %s2705_s10, %s1201_s17, %s2221_s14, %s2221_s14, %s2222_s23  }
 0x4b3 PF: > { %s2803_s5 = sld [smem:[#allocation17_spill]]  ;;  %s2804_s8 = sld [smem:[#allocation21_spill]] }
 0x4b4   : > { %p1915_p7 = scmp.ge.s32.totalorder %s2203_s20, 2 }
 0x4b9   : > { %s1229_s21 = sand.u32 1, %s2803_s5   ;;  %p2805_p8 = scmp.ne.s32.totalorder %s2804_s8, 0 }
 0x4ba   : > { %s1230_s15 = scalar_lea.sflag [#allocation4], %s1229_s21 }
 0x4bb   : > { %p1906_p10 = pnand %p1915_p7, %p2805_p8 }
 0x4bd   : > { %2186 = dma.done.wait (!%p1906_p10), %s1230_s15, 256  }
 0x4be   : > { %2188 = vsyncadd (!%p1906_p10), %s1230_s15, 4294967040  ;;  %s2806_s20 = sld [smem:[#allocation18_spill]]  ;;  %s2807_s27 = sld [smem:[#allocation19_spill]] }
 0x4bf   : > { %s2808_s17 = smov %s2195_s18  ;;  %s2809_s18 = smov %s2199_s19 }
 0x4c4   : > { %p28_p9 = scmp.ge.s32.totalorder %s2806_s20, 6   ;;  %s2810_s19 = smov %s2807_s27 }
 0x4c6   :  { %30 = sbr.rel (!%p28_p9) target bundleno = 13 (0xd), region = 137 }
 0x4cd   :  { %1235 = vsyncpa [#allocation3], 1 }
 0x4ce   :  { %1237 = vsyncpa [#allocation3 + $0x1], 1 }
 0x4cf   :  { %1238 = vsyncpa [#allocation6], 1 }
 0x4d0   :  { %1240 = vsyncpa [#allocation6 + $0x1], 1 }
 0x4d1   :  { %1241 = vsyncpa [#allocation9], 1 }
 0x4d2   :  { %1242 = vsyncpa [#allocation4], 1 }
 0x4d3   :  { %1244 = vsyncpa [#allocation4 + $0x1], 1 }

</bundles_post_ra>
